<compile_context>
chip_gen: v6e
topology: v6e:2x2x1
jax: 0.10.0
libtpu: 0.0.40
codegen_flags: <defaults>
</compile_context>

<pallas_src>
import jax
import jax.numpy as jnp
from jax.experimental import pallas as pl
from jax.experimental.pallas import tpu as pltpu


def _silu(x):
    return x * jax.nn.sigmoid(x)


def _round_up(x, m):
    return (x + m - 1) // m * m


def attention_atomwise_forward(features, batch_index, params, n_graphs,
                               inference=False, sigma=1.0, avge0=0.0,
                               max_tile_n=1024, n_splits=1):
    """features: (N, F) float32/bfloat16; batch_index: (N,) int graph ids in [0, n_graphs)."""
    features = features.reshape(features.shape[0], -1)
    N, F = features.shape
    hidden = params["w3"].shape[1]
    n_out = params["we3"].shape[1]
    cdt = features.dtype                       # MXU operand dtype (bf16 stays bf16)
    itemsize = features.dtype.itemsize

    # ---------------- tiling over the atom axis ----------------
    B_pad = _round_up(max(n_graphs, 1), 8)                 # accumulator rows (sublane mult)
    max_tile_n = max(128, _round_up(int(max_tile_n), 128))  # force lane-aligned tiles
    if N < 128:
        # tiny input: pad to a sublane multiple (cheap, <128 rows) and use a single tile
        rows = _round_up(max(N, 1), 8)
        feats = jnp.zeros((rows, F), features.dtype).at[:N].set(features)
        tile_n = rows
    else:
        # stream features from HBM unpadded; ragged last tile is masked in-kernel
        feats = features
        tile_n = min(max_tile_n, (N // 128) * 128)
        # cap so the double-buffered feature stream stays within ~24 MiB of VMEM
        cap = max(128, ((24 << 20) // (2 * F * itemsize)) // 128 * 128)
        tile_n = min(tile_n, cap)
    n_tiles = pl.cdiv(feats.shape[0], tile_n)
    n_splits = max(1, min(int(n_splits), n_tiles))          # leading "parallel" axis (v7x: 2 TCs)
    tiles_per_split = pl.cdiv(n_tiles, n_splits)
    needs_mask = (n_splits * tiles_per_split * tile_n) > N

    # Only the tiny batch-id row gets padded; index -1 never matches any graph row.
    batch_p = jnp.full((1, n_tiles * tile_n), -1, jnp.int32).at[0, :N].set(
        batch_index.astype(jnp.int32))

    # MXU operands in the feature dtype (native bf16 MXU path when features are bf16);
    # biases stay f32 and every dot accumulates in f32 via preferred_element_type.
    w1 = params["w1"].astype(cdt)
    w2 = params["w2"].astype(cdt)
    w3 = params["w3"].astype(cdt)
    b1 = params["b1"].astype(jnp.float32)
    b2 = params["b2"].astype(jnp.float32)
    b3 = params["b3"].astype(jnp.float32)
    wn_args = (w1, b1, w2, b2, w3, b3)

    # ---------------- kernel 1: weight_net + one-hot scatter-sum ----------------
    def weight_scatter_kernel(batch_ref, feat_ref,
                              w1_ref, b1_ref, w2_ref, b2_ref, w3_ref, b3_ref,
                              out_ref):
        s = pl.program_id(0)          # split index (parallel)
        i = pl.program_id(1)          # atom-tile within the split (reduction)

        @pl.when(i == 0)
        def _init():
            out_ref[...] = jnp.zeros_like(out_ref)

        x = feat_ref[...]                                             # (tile_n, F) cdt
        h = jnp.dot(x, w1_ref[...], preferred_element_type=jnp.float32) + b1_ref[...]
        h = _silu(h).astype(cdt)        # SiLU in f32, cast back to MXU dtype for next dot
        h = jnp.dot(h, w2_ref[...], preferred_element_type=jnp.float32) + b2_ref[...]
        h = _silu(h).astype(cdt)
        h = jnp.dot(h, w3_ref[...], preferred_element_type=jnp.float32) + b3_ref[...]

        if needs_mask:
            # zero ragged-tail / overhang rows; also scrubs garbage read from the
            # unspecified region of the partial boundary block so 0*NaN can't leak in.
            t = s * tiles_per_split + i
            rows = t * tile_n + jax.lax.broadcasted_iota(jnp.int32, (tile_n, 1), 0)
            h = jnp.where(rows < N, h, 0.0)

        seg = batch_ref[...]                                          # (1, tile_n) int32
        graph_iota = jax.lax.broadcasted_iota(jnp.int32, (B_pad, tile_n), 0)
        onehot = (graph_iota == seg).astype(cdt)                      # 0/1 exact in bf16
        out_ref[...] += jnp.dot(onehot, h.astype(cdt),
                                preferred_element_type=jnp.float32)
        # TODO(synk): for very large graph counts, use scalar-prefetched per-tile row
        # offsets to build a narrow windowed one-hot instead of the full (B_pad, tile_n).

    last_tile = n_tiles - 1

    def atom_tile(s, i):
        # clamp overhang (s, i) pairs into range; their rows are zeroed by the mask
        return jnp.minimum(s * tiles_per_split + i, last_tile)

    def const_spec(shape):
        nd = len(shape)
        return pl.BlockSpec(shape, lambda s, i: (0,) * nd)    # stays VMEM-resident

    in_specs = (
        [pl.BlockSpec((1, tile_n), lambda s, i: (0, atom_tile(s, i))),   # batch ids
         pl.BlockSpec((tile_n, F), lambda s, i: (atom_tile(s, i), 0))]   # feature stream
        + [const_spec(a.shape) for a in wn_args]
    )
    # TODO(synk): set pipeline_mode=pl.Buffered(3) on the feature spec if a bundle dump
    # shows exposed DMA on the feature stream (most relevant on v5e).

    wn_bytes = sum(int(a.size) * a.dtype.itemsize for a in wn_args)
    est = (2 * tile_n * F * itemsize          # double-buffered feature stream
           + 2 * tile_n * 4                   # batch-id row
           + 2 * wn_bytes                     # resident weight_net params
           + 2 * B_pad * hidden * 4           # resident partial-sum output block
           + (2 << 20))                       # headroom
    vmem_limit = int(min(max(est, 16 << 20), 56 << 20))   # stay under v7x's 64 MiB physical

    partials = pl.pallas_call(
        weight_scatter_kernel,
        out_shape=jax.ShapeDtypeStruct((n_splits, B_pad, hidden), jnp.float32),
        grid_spec=pltpu.PrefetchScalarGridSpec(
            num_scalar_prefetch=0,
            grid=(n_splits, tiles_per_split),
            in_specs=in_specs,
            # per-split partial sums accumulate directly in the resident output block
            out_specs=pl.BlockSpec((None, B_pad, hidden), lambda s, i: (s, 0, 0)),
        ),
        compiler_params=pltpu.CompilerParams(
            dimension_semantics=("parallel", "arbitrary"),
            vmem_limit_bytes=vmem_limit,
        ),
    )(batch_p, feats, *wn_args)

    # ---------------- kernel 2: combine partials + energy_net (tiny) ----------------
    we1 = params["we1"].astype(jnp.float32)
    be1 = params["be1"].astype(jnp.float32)
    we2 = params["we2"].astype(jnp.float32)
    be2 = params["be2"].astype(jnp.float32)
    we3 = params["we3"].astype(jnp.float32)
    en_args = (we1, be1, we2, be2, we3)

    def energy_kernel(parts_ref, we1_ref, be1_ref, we2_ref, be2_ref, we3_ref, out_ref):
        xs = jnp.sum(parts_ref[...], axis=0)                          # (B_pad, hidden) f32
        e = jnp.dot(xs, we1_ref[...], preferred_element_type=jnp.float32) + be1_ref[...]
        e = _silu(e)
        e = jnp.dot(e, we2_ref[...], preferred_element_type=jnp.float32) + be2_ref[...]
        e = _silu(e)
        e = jnp.dot(e, we3_ref[...], preferred_element_type=jnp.float32)   # no bias
        out_ref[...] = e.astype(out_ref.dtype)

    def full_spec(shape):
        nd = len(shape)
        return pl.BlockSpec(shape, lambda g: (0,) * nd)

    out = pl.pallas_call(
        energy_kernel,
        out_shape=jax.ShapeDtypeStruct((B_pad, n_out), jnp.float32),
        grid_spec=pltpu.PrefetchScalarGridSpec(
            num_scalar_prefetch=0,
            grid=(1,),
            in_specs=[full_spec(partials.shape)] + [full_spec(a.shape) for a in en_args],
            out_specs=full_spec((B_pad, n_out)),
        ),
        compiler_params=pltpu.CompilerParams(dimension_semantics=("arbitrary",)),
    )(partials, *en_args)

    y = jnp.squeeze(out[:n_graphs])    # torch .squeeze(): 0-d result when n_graphs == 1
    if inference:
        y = y * sigma + avge0
    return y


def init_params(key, feat_dim, attention_hidden_nc=64, n_hidden=(32, 16), n_out=1):
    ks = jax.random.split(key, 11)
    scale = 0.1

    def lin(k, fan_in, fan_out):
        return scale * jax.random.normal(k, (fan_in, fan_out), jnp.float32)

    return {
        # weight_net: F -> 64 -> 64 -> 64, all with bias
        "w1": lin(ks[0], feat_dim, attention_hidden_nc),
        "b1": scale * jax.random.normal(ks[1], (1, attention_hidden_nc), jnp.float32),
        "w2": lin(ks[2], attention_hidden_nc, attention_hidden_nc),
        "b2": scale * jax.random.normal(ks[3], (1, attention_hidden_nc), jnp.float32),
        "w3": lin(ks[4], attention_hidden_nc, attention_hidden_nc),
        "b3": scale * jax.random.normal(ks[5], (1, attention_hidden_nc), jnp.float32),
        # energy_net: 64 -> 32 (bias) -> 16 (bias) -> n_out (no bias)
        "we1": lin(ks[6], attention_hidden_nc, n_hidden[0]),
        "be1": scale * jax.random.normal(ks[7], (1, n_hidden[0]), jnp.float32),
        "we2": lin(ks[8], n_hidden[0], n_hidden[1]),
        "be2": scale * jax.random.normal(ks[9], (1, n_hidden[1]), jnp.float32),
        "we3": lin(ks[10], n_hidden[1], n_out),
    }


def reference_forward(features, batch_index, params, n_graphs):
    h = _silu(features @ params["w1"] + params["b1"])
    h = _silu(h @ params["w2"] + params["b2"])
    h = h @ params["w3"] + params["b3"]
    xs = jax.ops.segment_sum(h, batch_index, num_segments=n_graphs)
    e = _silu(xs @ params["we1"] + params["be1"])
    e = _silu(e @ params["we2"] + params["be2"])
    e = e @ params["we3"]
    return jnp.squeeze(e)


if __name__ == "__main__":
    key = jax.random.PRNGKey(0)
    k_feat, k_param, k_feat2, k_batch2 = jax.random.split(key, 4)

    feat_dim = 32
    params = init_params(k_param, feat_dim)

    # --- test 1: small synthetic molecule batch (single atom tile, exact-size block) ---
    N1, G1 = 16, 2
    feats1 = jax.random.normal(k_feat, (N1, feat_dim), jnp.float32)
    bidx1 = jnp.array([0] * 7 + [1] * 9, dtype=jnp.int32)
    y1 = jax.block_until_ready(attention_atomwise_forward(feats1, bidx1, params, G1))
    r1 = reference_forward(feats1, bidx1, params, G1)
    assert y1.shape == (G1,)
    assert jnp.allclose(y1, r1, atol=1e-4, rtol=1e-4), (y1, r1)

    # --- test 2: multi-tile reduction with an unpadded ragged tail (300 atoms, tile 128) ---
    N2, G2 = 300, 5
    feats2 = jax.random.normal(k_feat2, (N2, feat_dim), jnp.float32)
    bidx2 = jnp.sort(jax.random.randint(k_batch2, (N2,), 0, G2)).astype(jnp.int32)
    r2 = reference_forward(feats2, bidx2, params, G2)
    y2 = jax.block_until_ready(
        attention_atomwise_forward(feats2, bidx2, params, G2, max_tile_n=128))
    assert y2.shape == (G2,)
    assert jnp.allclose(y2, r2, atol=1e-4, rtol=1e-4), (y2, r2)

    # --- test 3: 2-way core split (v7x path; overhang tile exercises clamping + mask) ---
    y3 = jax.block_until_ready(
        attention_atomwise_forward(feats2, bidx2, params, G2, max_tile_n=128, n_splits=2))
    assert jnp.allclose(y3, r2, atol=1e-4, rtol=1e-4), (y3, r2)

    # --- test 4: bf16 feature stream (bf16 MXU operands, f32 accumulation) ---
    y4 = jax.block_until_ready(
        attention_atomwise_forward(feats2.astype(jnp.bfloat16), bidx2, params, G2,
                                   max_tile_n=128))
    assert jnp.allclose(y4, r2, atol=5e-2, rtol=1e-1), (y4, r2)

    print("KERNEL_OK")
</pallas_src>

<mosaic_0001>
module attributes {stable_mosaic.version = 11 : i64} {
  func.func @weight_scatter_kernel(%arg0: i32, %arg1: i32, %arg2: memref<1x16xi32, #tpu.memory_space<vmem>>, %arg3: memref<16x32xf32, #tpu.memory_space<vmem>>, %arg4: memref<32x64xf32, #tpu.memory_space<vmem>>, %arg5: memref<1x64xf32, #tpu.memory_space<vmem>>, %arg6: memref<64x64xf32, #tpu.memory_space<vmem>>, %arg7: memref<1x64xf32, #tpu.memory_space<vmem>>, %arg8: memref<64x64xf32, #tpu.memory_space<vmem>>, %arg9: memref<1x64xf32, #tpu.memory_space<vmem>>, %arg10: memref<1x8x64xf32, #tpu.memory_space<vmem>>) attributes {dimension_semantics = [#tpu.dimension_semantics<parallel>, #tpu.dimension_semantics<arbitrary>], iteration_bounds = array<i64: 1, 1>, scalar_prefetch = 0 : i64, scratch_operands = 0 : i64, tpu.core_type = #tpu.core_type<tc>, window_params = [{transform_indices = @transform_0, window_bounds = array<i64: 1, 16>}, {transform_indices = @transform_1, window_bounds = array<i64: 16, 32>}, {pipeline_mode = #tpu.pipeline_mode<synchronous>, transform_indices = @transform_2, window_bounds = array<i64: 32, 64>}, {pipeline_mode = #tpu.pipeline_mode<synchronous>, transform_indices = @transform_3, window_bounds = array<i64: 1, 64>}, {pipeline_mode = #tpu.pipeline_mode<synchronous>, transform_indices = @transform_4, window_bounds = array<i64: 64, 64>}, {pipeline_mode = #tpu.pipeline_mode<synchronous>, transform_indices = @transform_5, window_bounds = array<i64: 1, 64>}, {pipeline_mode = #tpu.pipeline_mode<synchronous>, transform_indices = @transform_6, window_bounds = array<i64: 64, 64>}, {pipeline_mode = #tpu.pipeline_mode<synchronous>, transform_indices = @transform_7, window_bounds = array<i64: 1, 64>}, {transform_indices = @transform_8, window_bounds = array<i64: 1, 8, 64>}]} {
    %c0_i32 = arith.constant 0 : i32
    %0 = arith.cmpi eq, %arg1, %c0_i32 : i32
    %1 = arith.extui %0 : i1 to i32
    %c0_i32_0 = arith.constant 0 : i32
    %2 = arith.cmpi ne, %1, %c0_i32_0 : i32
    scf.if %2 {
      %cst_27 = arith.constant 0.000000e+00 : f32
      %44 = vector.broadcast %cst_27 : f32 to vector<8x64xf32>
      %c0_28 = arith.constant 0 : index
      %c0_29 = arith.constant 0 : index
      %c0_30 = arith.constant 0 : index
      %45 = vector.load %arg10[%c0_28, %c0_29, %c0_30] : memref<1x8x64xf32, #tpu.memory_space<vmem>>, vector<1x8x64xf32>
      %46 = vector.shape_cast %45 : vector<1x8x64xf32> to vector<8x64xf32>
      %47 = vector.shape_cast %44 : vector<8x64xf32> to vector<1x8x64xf32>
      tpu.vector_store %arg10[%c0_28, %c0_29, %c0_30], %47 {strides = array<i32>} : memref<1x8x64xf32, #tpu.memory_space<vmem>>, vector<1x8x64xf32>,
    } else {
    }
    %c0 = arith.constant 0 : index
    %c0_1 = arith.constant 0 : index
    %3 = vector.load %arg3[%c0, %c0_1] : memref<16x32xf32, #tpu.memory_space<vmem>>, vector<16x32xf32>
    %c0_2 = arith.constant 0 : index
    %c0_3 = arith.constant 0 : index
    %4 = vector.load %arg4[%c0_2, %c0_3] : memref<32x64xf32, #tpu.memory_space<vmem>>, vector<32x64xf32>
    %cst = arith.constant dense<0.000000e+00> : vector<16x64xf32>
    %5 = tpu.matmul %3, %4, %cst {dimension_numbers = #tpu.dot_dimension_numbers<[1], [0], [0], [1], [0, 0, 1, 1], [], []>} : vector<16x32xf32>, vector<32x64xf32>, vector<16x64xf32> -> vector<16x64xf32>
    %c0_4 = arith.constant 0 : index
    %c0_5 = arith.constant 0 : index
    %6 = vector.load %arg5[%c0_4, %c0_5] : memref<1x64xf32, #tpu.memory_space<vmem>>, vector<1x64xf32>
    %7 = vector.broadcast %6 : vector<1x64xf32> to vector<16x64xf32>
    %8 = arith.addf %5, %7 : vector<16x64xf32>
    %9 = arith.negf %8 : vector<16x64xf32>
    %10 = math.exp %9 : vector<16x64xf32>
    %cst_6 = arith.constant 1.000000e+00 : f32
    %11 = vector.broadcast %cst_6 : f32 to vector<16x64xf32>
    %12 = arith.addf %11, %10 : vector<16x64xf32>
    %13 = arith.divf %11, %12 : vector<16x64xf32>
    %14 = arith.mulf %8, %13 : vector<16x64xf32>
    %c0_7 = arith.constant 0 : index
    %c0_8 = arith.constant 0 : index
    %15 = vector.load %arg6[%c0_7, %c0_8] : memref<64x64xf32, #tpu.memory_space<vmem>>, vector<64x64xf32>
    %cst_9 = arith.constant dense<0.000000e+00> : vector<16x64xf32>
    %16 = tpu.matmul %14, %15, %cst_9 {dimension_numbers = #tpu.dot_dimension_numbers<[1], [0], [0], [1], [0, 0, 1, 1], [], []>} : vector<16x64xf32>, vector<64x64xf32>, vector<16x64xf32> -> vector<16x64xf32>
    %c0_10 = arith.constant 0 : index
    %c0_11 = arith.constant 0 : index
    %17 = vector.load %arg7[%c0_10, %c0_11] : memref<1x64xf32, #tpu.memory_space<vmem>>, vector<1x64xf32>
    %18 = vector.broadcast %17 : vector<1x64xf32> to vector<16x64xf32>
    %19 = arith.addf %16, %18 : vector<16x64xf32>
    %20 = arith.negf %19 : vector<16x64xf32>
    %21 = math.exp %20 : vector<16x64xf32>
    %cst_12 = arith.constant 1.000000e+00 : f32
    %22 = vector.broadcast %cst_12 : f32 to vector<16x64xf32>
    %23 = arith.addf %22, %21 : vector<16x64xf32>
    %24 = arith.divf %22, %23 : vector<16x64xf32>
    %25 = arith.mulf %19, %24 : vector<16x64xf32>
    %c0_13 = arith.constant 0 : index
    %c0_14 = arith.constant 0 : index
    %26 = vector.load %arg8[%c0_13, %c0_14] : memref<64x64xf32, #tpu.memory_space<vmem>>, vector<64x64xf32>
    %cst_15 = arith.constant dense<0.000000e+00> : vector<16x64xf32>
    %27 = tpu.matmul %25, %26, %cst_15 {dimension_numbers = #tpu.dot_dimension_numbers<[1], [0], [0], [1], [0, 0, 1, 1], [], []>} : vector<16x64xf32>, vector<64x64xf32>, vector<16x64xf32> -> vector<16x64xf32>
    %c0_16 = arith.constant 0 : index
    %c0_17 = arith.constant 0 : index
    %28 = vector.load %arg9[%c0_16, %c0_17] : memref<1x64xf32, #tpu.memory_space<vmem>>, vector<1x64xf32>
    %29 = vector.broadcast %28 : vector<1x64xf32> to vector<16x64xf32>
    %30 = arith.addf %27, %29 : vector<16x64xf32>
    %c0_18 = arith.constant 0 : index
    %c0_19 = arith.constant 0 : index
    %31 = vector.load %arg2[%c0_18, %c0_19] : memref<1x16xi32, #tpu.memory_space<vmem>>, vector<1x16xi32>
    %32 = tpu.iota {dimensions = array<i32: 0>} : vector<8x16xi32>
    %33 = vector.broadcast %31 : vector<1x16xi32> to vector<8x16xi32>
    %34 = arith.cmpi eq, %32, %33 : vector<8x16xi32>
    %35 = arith.extui %34 : vector<8x16xi1> to vector<8x16xi32>
    %36 = arith.sitofp %35 : vector<8x16xi32> to vector<8x16xf32>
    %c0_20 = arith.constant 0 : index
    %c0_21 = arith.constant 0 : index
    %c0_22 = arith.constant 0 : index
    %37 = vector.load %arg10[%c0_20, %c0_21, %c0_22] : memref<1x8x64xf32, #tpu.memory_space<vmem>>, vector<1x8x64xf32>
    %38 = vector.shape_cast %37 : vector<1x8x64xf32> to vector<8x64xf32>
    %cst_23 = arith.constant dense<0.000000e+00> : vector<8x64xf32>
    %39 = tpu.matmul %36, %30, %cst_23 {dimension_numbers = #tpu.dot_dimension_numbers<[1], [0], [0], [1], [0, 0, 1, 1], [], []>} : vector<8x16xf32>, vector<16x64xf32>, vector<8x64xf32> -> vector<8x64xf32>
    %40 = arith.addf %38, %39 : vector<8x64xf32>
    %c0_24 = arith.constant 0 : index
    %c0_25 = arith.constant 0 : index
    %c0_26 = arith.constant 0 : index
    %41 = vector.load %arg10[%c0_24, %c0_25, %c0_26] : memref<1x8x64xf32, #tpu.memory_space<vmem>>, vector<1x8x64xf32>
    %42 = vector.shape_cast %41 : vector<1x8x64xf32> to vector<8x64xf32>
    %43 = vector.shape_cast %40 : vector<8x64xf32> to vector<1x8x64xf32>
    tpu.vector_store %arg10[%c0_24, %c0_25, %c0_26], %43 {strides = array<i32>} : memref<1x8x64xf32, #tpu.memory_space<vmem>>, vector<1x8x64xf32>,
    return
  }
  func.func @transform_0(%arg0: i32, %arg1: i32) -> (i32, i32) {
    %c1_i32 = arith.constant 1 : i32
    %0 = arith.muli %arg0, %c1_i32 : i32
    %1 = arith.addi %0, %arg1 : i32
    %c0_i32 = arith.constant 0 : i32
    %2 = arith.minsi %1, %c0_i32 : i32
    %c0_i32_0 = arith.constant 0 : i32
    %c0_i32_1 = arith.constant 0 : i32
    return %c0_i32_0, %2 : i32, i32
  }
  func.func @transform_1(%arg0: i32, %arg1: i32) -> (i32, i32) {
    %c1_i32 = arith.constant 1 : i32
    %0 = arith.muli %arg0, %c1_i32 : i32
    %1 = arith.addi %0, %arg1 : i32
    %c0_i32 = arith.constant 0 : i32
    %2 = arith.minsi %1, %c0_i32 : i32
    %c0_i32_0 = arith.constant 0 : i32
    %c0_i32_1 = arith.constant 0 : i32
    return %2, %c0_i32_0 : i32, i32
  }
  func.func @transform_2(%arg0: i32, %arg1: i32) -> (i32, i32) {
    %c0_i32 = arith.constant 0 : i32
    %c0_i32_0 = arith.constant 0 : i32
    %c0_i32_1 = arith.constant 0 : i32
    return %c0_i32, %c0_i32_0 : i32, i32
  }
  func.func @transform_3(%arg0: i32, %arg1: i32) -> (i32, i32) {
    %c0_i32 = arith.constant 0 : i32
    %c0_i32_0 = arith.constant 0 : i32
    %c0_i32_1 = arith.constant 0 : i32
    return %c0_i32, %c0_i32_0 : i32, i32
  }
  func.func @transform_4(%arg0: i32, %arg1: i32) -> (i32, i32) {
    %c0_i32 = arith.constant 0 : i32
    %c0_i32_0 = arith.constant 0 : i32
    %c0_i32_1 = arith.constant 0 : i32
    return %c0_i32, %c0_i32_0 : i32, i32
  }
  func.func @transform_5(%arg0: i32, %arg1: i32) -> (i32, i32) {
    %c0_i32 = arith.constant 0 : i32
    %c0_i32_0 = arith.constant 0 : i32
    %c0_i32_1 = arith.constant 0 : i32
    return %c0_i32, %c0_i32_0 : i32, i32
  }
  func.func @transform_6(%arg0: i32, %arg1: i32) -> (i32, i32) {
    %c0_i32 = arith.constant 0 : i32
    %c0_i32_0 = arith.constant 0 : i32
    %c0_i32_1 = arith.constant 0 : i32
    return %c0_i32, %c0_i32_0 : i32, i32
  }
  func.func @transform_7(%arg0: i32, %arg1: i32) -> (i32, i32) {
    %c0_i32 = arith.constant 0 : i32
    %c0_i32_0 = arith.constant 0 : i32
    %c0_i32_1 = arith.constant 0 : i32
    return %c0_i32, %c0_i32_0 : i32, i32
  }
  func.func @transform_8(%arg0: i32, %arg1: i32) -> (i32, i32, i32) {
    %c0_i32 = arith.constant 0 : i32
    %c0_i32_0 = arith.constant 0 : i32
    %c0_i32_1 = arith.constant 0 : i32
    return %arg0, %c0_i32, %c0_i32_0 : i32, i32, i32
  }
}

</mosaic_0001>

<bundles_post_ra>
// kernel: tpu_custom_call.1
= control target key start
LH: loop header
LB: loop body
LE: loop exit
PB: predicated region body
PF: predicated region fallthrough
CT: control target
= control target key end

     0   :  { %13 = vsyncpa [#allocation3], 0  ;;  %s901_s0 = inlined_call_operand.hbm [shape: s32[1,16], index: 0, kind: input, shape index: {}]   ;;  %s902_s1 = inlined_call_operand.hbm [shape: f32[16,32], index: 1, kind: input, shape index: {}]   ;;  %s903_s2 = inlined_call_operand.hbm [shape: f32[32,64], index: 2, kind: input, shape index: {}]   ;;  %s904_s3 = inlined_call_operand.vmem [shape: f32[1,64], index: 3, kind: input, shape index: {}]   ;;  %s905_s4 = inlined_call_operand.hbm [shape: f32[64,64], index: 4, kind: input, shape index: {}]   ;;  %s906_s5 = inlined_call_operand.vmem [shape: f32[1,64], index: 5, kind: input, shape index: {}]   ;;  %s907_s6 = inlined_call_operand.hbm [shape: f32[64,64], index: 6, kind: input, shape index: {}]   ;;  %s908_s7 = inlined_call_operand.vmem [shape: f32[1,64], index: 7, kind: input, shape index: {}]   ;;  %s909_s8 = inlined_call_operand.hbm [shape: f32[1,8,64], index: 8, kind: output, shape index: {}]  }
   0x1   :  { %14 = vsyncpa [#allocation6], 0 }
   0x2   :  { %15 = vsyncpa [#allocation9], 0 }
   0x3   :  { %16 = vsyncpa [#allocation4], 0  ;;  %s799_s27 = smov [#allocation5]  }
   0x4   :  { %s43_s28 = sshll.u32 %s799_s27, 4  ;;  %s44_s28 = int_to_ptr.vmem [resolvable:$true] %s43_s28 }
   0x5   :  { %s679_s29 = scalar_lea.vmem %s44_s28, 256  ;;  %p684_p1 = scmp.lt.s32.totalorder %s44_s28, %s44_s28 }
   0x6   :  { %p680_p0 = scmp.ne.s32.totalorder %s44_s28, %s679_s29  ;;  %p685_p2 = scmp.lt.s32.totalorder %s679_s29, %s679_s29 }
   0x8   :  { %p686_p3 = por %p685_p2, %p684_p1 }
   0xa   :  { %p687_p4 = pnand %p686_p3, %p680_p0 }
   0xc   :  { %690 = shalt.err (!%p687_p4)
}
   0xd   :  { %s800_s30 = smov 128   ;;  %s801_s9 = smov 8  }
   0xe   :  { %49 = dma.hbm_to_vmem [thread:$0]  %s902_s1, 256, %s44_s28, [#allocation6], %s800_s30, %s800_s30, %s801_s9  }
   0xf   :  { %s802_s12 = smov [#allocation8]   ;;  %s803_s14 = smov [#allocation2]  }
  0x10   :  { %s69_s13 = sshll.u32 %s802_s12, 4  ;;  %s28_s15 = sshll.u32 %s803_s14, 4  ;;  %s70_s13 = int_to_ptr.vmem [resolvable:$true] %s69_s13  ;;  %s29_s15 = int_to_ptr.vmem [resolvable:$true] %s28_s15 }
  0x11   :  { %s699_s16 = scalar_lea.vmem %s70_s13, 1024  ;;  %p704_p6 = scmp.lt.s32.totalorder %s70_s13, %s70_s13 }
  0x12   :  { %p700_p5 = scmp.ne.s32.totalorder %s70_s13, %s699_s16  ;;  %p705_p7 = scmp.lt.s32.totalorder %s699_s16, %s699_s16 }
  0x14   :  { %p706_p8 = por %p705_p7, %p704_p6 }
  0x16   :  { %p707_p9 = pnand %p706_p8, %p700_p5 }
  0x18   :  { %710 = shalt.err (!%p707_p9)
}
  0x19   :  { %75 = dma.hbm_to_vmem [thread:$0]  %s905_s4, 1024, %s70_s13, [#allocation9], %s800_s30, %s800_s30, %s801_s9  }
  0x1a   :  { %s719_s1 = scalar_lea.vmem %s29_s15, 16  ;;  %s723_s19 = scalar_lea.vmem %s29_s15, 32 }
  0x1b   :  { %p720_p10 = scmp.ne.s32.totalorder %s29_s15, %s719_s1  ;;  %p724_p11 = scmp.lt.s32.totalorder %s29_s15, %s29_s15 }
  0x1c   :  { %p725_p12 = scmp.lt.s32.totalorder %s723_s19, %s719_s1 }
  0x1e   :  { %p726_p13 = por %p725_p12, %p724_p11 }
  0x20   :  { %p727_p0 = pnand %p726_p13, %p720_p10 }
  0x22   :  { %730 = shalt.err (!%p727_p0)
}
  0x23   :  { %31 = dma.hbm_to_vmem [thread:$0]  %s901_s0, 16, %s29_s15, [#allocation3]  }
  0x24   :  { %s804_s22 = smov [#allocation7]   ;;  %s805_s24 = smov [#allocation10]  }
  0x25   :  { %s55_s23 = sshll.u32 %s804_s22, 4  ;;  %s83_s25 = sshll.u32 %s805_s24, 4  ;;  %s56_s23 = int_to_ptr.vmem [resolvable:$true] %s55_s23  ;;  %s84_s25 = int_to_ptr.vmem [resolvable:$true] %s83_s25 }
  0x26   :  { %s739_s26 = scalar_lea.vmem %s56_s23, 512  ;;  %p744_p2 = scmp.lt.s32.totalorder %s56_s23, %s56_s23 }
  0x27   :  { %p740_p1 = scmp.ne.s32.totalorder %s56_s23, %s739_s26  ;;  %p745_p3 = scmp.lt.s32.totalorder %s739_s26, %s739_s26 }
  0x29   :  { %p746_p4 = por %p745_p3, %p744_p2 }
  0x2b   :  { %p747_p5 = pnand %p746_p4, %p740_p1 }
  0x2d   :  { %750 = shalt.err (!%p747_p5)
}
  0x2e   :  { %61 = dma.hbm_to_vmem [thread:$0]  %s903_s2, 512, %s56_s23, [#allocation6], %s800_s30, %s800_s30, %s801_s9  }
  0x2f   :  { %s759_s0 = scalar_lea.vmem %s84_s25, 1024  ;;  %p764_p7 = scmp.lt.s32.totalorder %s84_s25, %s84_s25 }
  0x30   :  { %p760_p6 = scmp.ne.s32.totalorder %s84_s25, %s759_s0  ;;  %p765_p8 = scmp.lt.s32.totalorder %s759_s0, %s759_s0 }
  0x32   :  { %p766_p9 = por %p765_p8, %p764_p7 }
  0x34   :  { %p767_p10 = pnand %p766_p9, %p760_p6 }
  0x36   :  { %770 = shalt.err (!%p767_p10)
}
  0x37   :  { %89 = dma.hbm_to_vmem [thread:$0]  %s907_s6, 1024, %s84_s25, [#allocation9], %s800_s30, %s800_s30, %s801_s9  }
  0x38   :  { %791 = dma.done.wait [#allocation3], 16  }
  0x39   :  { %792 = vsyncadd [#allocation3], 4294967280 }
  0x3a   :  { %793 = dma.done.wait [#allocation6], 768  }
  0x3b   :  { %794 = vsyncadd [#allocation6], 4294966528 }
  0x3c   :  { %795 = dma.done.wait [#allocation9], 2048  }
  0x3d   :  { %796 = vsyncadd [#allocation9], 4294965248  ;;  %vm133_vm0 = vcmask 261120   ;;  %v125_v0 = vld [vmem:[#allocation7 + $0x18] sm:$0xff]  ;;  %v124_v1 = vld [vmem:[#allocation7 + $0x10] sm:$0xff]  ;;  %vm118_vm1 = vcmask 523264   ;;  %v437_v53 = vlaneseq }
  0x3e   :  { %589 = vmatprep.subr.mxu0 %v125_v0  ;;  %v120_v2 = vld [vmem:[#allocation5] sm:$0xff]  ;;  %v123_v3 = vld [vmem:[#allocation7 + $0x8] sm:$0xff]  ;;  %v122_v4 = vld [vmem:[#allocation7] sm:$0xff]  ;;  %v806_v52 = vmov 0.0   ;;  %vm807_vm2 = vmmov 0   ;;  %vm447_vm4 = vcmask 130048  }
  0x3f   :  { %590 = vmatpush3.msra.mxu0 %v125_v0  ;;  %597 = vmatprep.mubr.msk.f32.mxu0 %vm133_vm0, %v120_v2  ;;  %v121_v5 = vld [vmem:[#allocation5 + $0x8] sm:$0xff]  ;;  %v235_v7 = vld [vmem:[#allocation8 + $0x30] sm:$0xff]  ;;  %v234_v8 = vld [vmem:[#allocation8 + $0x28] sm:$0xff]  ;;  %119 = vst.msk [vmem:[#allocation11] sm:$0xff] %vm118_vm1, %v806_v52  ;;  %v438_v54 = vshrl.u32 %v437_v53, 7  ;;  %s808_s10 = smov [#allocation11]  }
  0x40   :  { %591 = vmatprep.subr.mxu0 %v124_v1  ;;  %v236_v6 = vld [vmem:[#allocation8 + $0x38] sm:$0xff]  ;;  %v233_v9 = vld [vmem:[#allocation8 + $0x20] sm:$0xff]  ;;  %v231_v11 = vld [vmem:[#allocation8 + $0x10] sm:$0xff]  ;;  %s529_s11 = sshll.u32 %s808_s10, 4  ;;  %s530_s11 = int_to_ptr.vmem [resolvable:$true] %s529_s11 }
  0x41   :  { %592 = vmatpush3.msra.mxu0 %v124_v1  ;;  %600 = vmatprep.subr.mxu1 %v236_v6  ;;  %v232_v10 = vld [vmem:[#allocation8 + $0x18] sm:$0xff]  ;;  %v230_v12 = vld [vmem:[#allocation8 + $0x8] sm:$0xff]  ;;  %v229_v13 = vld [vmem:[#allocation8] sm:$0xff]  ;;  %p776_p12 = scmp.lt.s32.totalorder %s530_s11, %s530_s11 }
  0x42   :  { %593 = vmatprep.subr.mxu0 %v123_v3  ;;  %601 = vmatpush3.msra.mxu1 %v236_v6  ;;  %v544_v14 = vld [vmem:[%s904_s3] ss:$0 sm:$0xff]  ;;  %v347_v29 = vld [vmem:[#allocation10 + $0x38] sm:$0xff]  ;;  %v346_v30 = vld [vmem:[#allocation10 + $0x30] sm:$0xff] }
  0x43   :  { %594 = vmatpush3.msra.mxu0 %v123_v3  ;;  %602 = vmatprep.subr.mxu1 %v235_v7  ;;  %v345_v31 = vld [vmem:[#allocation10 + $0x28] sm:$0xff]  ;;  %v344_v32 = vld [vmem:[#allocation10 + $0x20] sm:$0xff]  ;;  %v343_v33 = vld [vmem:[#allocation10 + $0x18] sm:$0xff] }
  0x44   :  { %595 = vmatprep.subr.mxu0 %v122_v4  ;;  %603 = vmatpush3.msra.mxu1 %v235_v7  ;;  %v342_v34 = vld [vmem:[#allocation10 + $0x10] sm:$0xff]  ;;  %v341_v35 = vld [vmem:[#allocation10 + $0x8] sm:$0xff]  ;;  %v340_v36 = vld [vmem:[#allocation10] sm:$0xff] }
  0x45   :  { %596 = vmatpush3.msra.mxu0 %v122_v4  ;;  %604 = vmatprep.subr.mxu1 %v234_v8  ;;  %v549_v37 = vld [vmem:[%s906_s5] ss:$0 sm:$0xff] }
  0x46   :  { %598 = vmatmul.mubr.msk.f32.vlgmr.msra.gmra.mxu0 %vm133_vm0, %v121_v5  ;;  %605 = vmatpush3.msra.mxu1 %v234_v8  ;;  %v557_v55 = vld [vmem:[#allocation2] ss:$0 sm:$0xff]  ;;  %v446_v62 = vld [vmem:[#allocation11] sm:$0xff] }
  0x47   :  { %606 = vmatprep.subr.mxu1 %v233_v9  ;;  %619 = vmatprep.subr.mxu0 %v347_v29  ;;  %v554_v56 = vld [vmem:[%s908_s7] ss:$0 sm:$0xff]  ;;  %vm443_vm3 = vcmp.eq.s32.totalorder %v438_v54, %v557_v55  ;;  %s771_s7 = scalar_lea.vmem %s530_s11, 128 }
  0x48   :  { %607 = vmatpush3.msra.mxu1 %v233_v9  ;;  %620 = vmatpush3.msra.mxu0 %v347_v29  ;;  %v558_v61 = vsel %vm443_vm3, 1.0, %v806_v52  ;;  %p772_p11 = scmp.ne.s32.totalorder %s530_s11, %s771_s7  ;;  %p777_p13 = scmp.lt.s32.totalorder %s771_s7, %s771_s7 }
  0x49   :  { %608 = vmatprep.subr.mxu1 %v232_v10  ;;  %621 = vmatprep.subr.mxu0 %v346_v30 }
  0x4a   :  { %609 = vmatpush3.msra.mxu1 %v232_v10  ;;  %622 = vmatpush3.msra.mxu0 %v346_v30  ;;  %p778_p0 = por %p777_p13, %p776_p12 }
  0x4b   :  { %610 = vmatprep.subr.mxu1 %v231_v11  ;;  %623 = vmatprep.subr.mxu0 %v345_v31 }
  0x4c   :  { %611 = vmatpush3.msra.mxu1 %v231_v11  ;;  %624 = vmatpush3.msra.mxu0 %v345_v31  ;;  %p779_p1 = pnand %p778_p0, %p772_p11 }
  0x4d   :  { %612 = vmatprep.subr.mxu1 %v230_v12  ;;  %625 = vmatprep.subr.mxu0 %v344_v32 }
  0x4e   :  { %613 = vmatpush3.msra.mxu1 %v230_v12  ;;  %626 = vmatpush3.msra.mxu0 %v344_v32 }
  0x4f   :  { %614 = vmatprep.subr.mxu1 %v229_v13  ;;  %627 = vmatprep.subr.mxu0 %v343_v33 }
  0x50   :  { %615 = vmatpush3.msra.mxu1 %v229_v13  ;;  %628 = vmatpush3.msra.mxu0 %v343_v33 }
  0x51   :  { %629 = vmatprep.subr.mxu0 %v342_v34  ;;  %638 = vmatprep.subr.mxu1 %v806_v52 }
  0x52   :  { %630 = vmatpush3.msra.mxu0 %v342_v34 }
  0x53   :  { %631 = vmatprep.subr.mxu0 %v341_v35 }
  0x54   :  { %632 = vmatpush3.msra.mxu0 %v341_v35 }
  0x55   :  { %633 = vmatprep.subr.mxu0 %v340_v36 }
  0x56   :  { %634 = vmatpush3.msra.mxu0 %v340_v36 }
 0x106   :  { %v599_v15 = vpop.f32.mrf.mxu0 }
 0x107   :  { %v212_v16 = vadd.f32 %v599_v15, %v544_v14 }
 0x108   :  { %v206_v17 = vpop.f32.mrf.mxu0 }
 0x109   :  { %v548_v18 = vmul.f32 -1.442695, %v212_v16  ;;  %v207_v19 = vadd.f32 %v544_v14, %v206_v17 }
 0x10b   :  { %655 = vpow2.f32 %v548_v18  ;;  %v547_v20 = vmul.f32 -1.442695, %v207_v19 }
 0x10d   :  { %657 = vpow2.f32 %v547_v20 }
 0x118   :  { %v656_v21 = vpop.eup %655 }
 0x119   :  { %v222_v22 = vadd.f32 1.0, %v656_v21 }
 0x11a   :  { %v658_v23 = vpop.eup %657 }
 0x11b   :  { %v221_v24 = vadd.f32 1.0, %v658_v23  ;;  %659 = vrcp.f32 %v222_v22 }
 0x11d   :  { %661 = vrcp.f32 %v221_v24 }
 0x128   :  { %v660_v25 = vpop.eup %659 }
 0x129   :  { %v228_v28 = vmul.f32 %v660_v25, %v212_v16 }
 0x12a   :  { %v662_v26 = vpop.eup %661 }
 0x12b   :  { %v227_v27 = vmul.f32 %v662_v26, %v207_v19 }
 0x12d   :  { %616 = vmatprep.mubr.msk.f32.mxu1 %vm118_vm1, %v227_v27 }
 0x12e   :  { %617 = vmatmul.mubr.msk.f32.vlgmr.msra.gmra.mxu1 %vm118_vm1, %v228_v28 }
 0x12f   :  { %642 = vmatprep.mubr.msk.f32.mxu1 %vm807_vm2, %v806_v52 }
 0x1ee   :  { %v618_v38 = vpop.f32.mrf.mxu1 }
 0x1ef   :  { %v323_v39 = vadd.f32 %v618_v38, %v549_v37 }
 0x1f0   :  { %v317_v40 = vpop.f32.mrf.mxu1 }
 0x1f1   :  { %v553_v41 = vmul.f32 -1.442695, %v323_v39  ;;  %v318_v42 = vadd.f32 %v549_v37, %v317_v40 }
 0x1f3   :  { %663 = vpow2.f32 %v553_v41  ;;  %v552_v43 = vmul.f32 -1.442695, %v318_v42 }
 0x1f5   :  { %665 = vpow2.f32 %v552_v43 }
 0x200   :  { %v664_v44 = vpop.eup %663 }
 0x201   :  { %v333_v45 = vadd.f32 1.0, %v664_v44 }
 0x202   :  { %v666_v46 = vpop.eup %665 }
 0x203   :  { %v332_v47 = vadd.f32 1.0, %v666_v46  ;;  %667 = vrcp.f32 %v333_v45 }
 0x205   :  { %669 = vrcp.f32 %v332_v47 }
 0x210   :  { %v668_v48 = vpop.eup %667 }
 0x211   :  { %v339_v51 = vmul.f32 %v668_v48, %v323_v39 }
 0x212   :  { %v670_v49 = vpop.eup %669 }
 0x213   :  { %v338_v50 = vmul.f32 %v670_v49, %v318_v42 }
 0x215   :  { %635 = vmatprep.mubr.msk.f32.mxu0 %vm118_vm1, %v338_v50 }
 0x216   :  { %636 = vmatmul.mubr.msk.f32.vlgmr.msra.gmra.mxu0 %vm118_vm1, %v339_v51 }
 0x2d6   :  { %v637_v57 = vpop.f32.mrf.mxu0 }
 0x2d7   :  { %v433_v58 = vadd.f32 %v637_v57, %v554_v56 }
 0x2d8   :  { %v427_v59 = vpop.f32.mrf.mxu0 }
 0x2d9   :  { %v428_v60 = vadd.f32 %v554_v56, %v427_v59  ;;  %639 = vmatpush3.msra.mxu1 %v433_v58 }
 0x2da   :  { %640 = vmatprep.subr.mxu1 %v806_v52 }
 0x2db   :  { %641 = vmatpush3.msra.mxu1 %v428_v60 }
 0x2dc   :  { %643 = vmatmul.mubr.msk.f32.vlgmr.msra.gmra.mxu1 %vm447_vm4, %v558_v61 }
 0x39c   :  { %v517_v63 = vpop.f32.mrf.mxu1 }
 0x39d   :  { %v521_v0 = vadd.f32 %v517_v63, %v446_v62 }
 0x39e   :  { %v644_v1 = vpop.f32.mrf.mxu1 }
 0x39f   :  { %522 = vst.msk [vmem:[#allocation11] sm:$0xff] %vm118_vm1, %v521_v0 }
 0x3a0   :  { %782 = shalt.err (!%p779_p1)
}
 0x3a1   :  { %532 = dma.vmem_to_hbm [thread:$0]  %s530_s11, 128, %s909_s8, [#allocation4]  }
 0x3a2   :  { %797 = dma.done.wait [#allocation4], 128  }
 0x3a3   :  { %798 = vsyncadd [#allocation4], 4294967168 }
 0x3a4   :  { %536 = vsyncpa [#allocation3], 1 }
 0x3a5   :  { %537 = vsyncpa [#allocation6], 1 }
 0x3a6   :  { %538 = vsyncpa [#allocation9], 1 }
 0x3a7   :  { %539 = vsyncpa [#allocation4], 1 }

</bundles_post_ra>
